<compile_context>
chip_gen: v7x
topology: tpu7x:2x2x1
jax: 0.10.0
libtpu: 0.0.40
codegen_flags: <defaults>
</compile_context>

<pallas_src>
import jax
import jax.numpy as jnp
from jax import lax
from jax.experimental import pallas as pl
from jax.experimental.pallas import tpu as pltpu

_LANES = 128


def _round_up(v: int, m: int) -> int:
    return ((v + m - 1) // m) * m


def _vmem_capacity_bytes() -> int:
    try:
        info = pltpu.get_tpu_info()
        v = getattr(info, "vmem_capacity_bytes", None)
        if v:
            return int(v)
    except Exception:
        pass
    return 64 << 20  # conservative: v7x per-core VMEM


def _default_block_rows(itemsize: int, sublane: int) -> int:
    # 2 inputs x 2 pipeline buffers x block_bytes ~ <= vmem / 3.
    vmem = _vmem_capacity_bytes()
    block_bytes = vmem // 12
    rows = block_bytes // (_LANES * itemsize)
    rows = max(sublane, (rows // 512) * 512)
    return int(min(rows, 16384))


def _ccc_partial_moments_kernel(n_ref, shift_ref, x_ref, y_ref, out_ref, acc_ref):
    """Accumulates shifted raw moments per parallel shard.

    acc_ref rows: 0=sum(u), 1=sum(v), 2=sum(u*u), 3=sum(v*v), 4=sum(u*v).
    """
    c = pl.program_id(0)          # parallel shard (2 TCs on v7x)
    s = pl.program_id(1)          # sequential reduction step within shard

    @pl.when(s == 0)
    def _init():
        acc_ref[...] = jnp.zeros_like(acc_ref)

    n = n_ref[0]
    a = shift_ref[0]
    b = shift_ref[1]

    block_rows, lanes = x_ref.shape
    block_elems = block_rows * lanes
    # Un-clamped global element offset of this step (the index_map clamps the
    # actual block index; overshoot steps are fully masked out below).
    base = (c * pl.num_programs(1) + s) * block_elems

    def _accumulate(u, v):
        acc_ref[0:1, :] += jnp.sum(u, axis=0, keepdims=True)
        acc_ref[1:2, :] += jnp.sum(v, axis=0, keepdims=True)
        acc_ref[2:3, :] += jnp.sum(u * u, axis=0, keepdims=True)
        acc_ref[3:4, :] += jnp.sum(v * v, axis=0, keepdims=True)
        acc_ref[4:5, :] += jnp.sum(u * v, axis=0, keepdims=True)

    @pl.when(base + block_elems <= n)          # fully valid block: no mask
    def _full():
        _accumulate(x_ref[...].astype(jnp.float32) - a,
                    y_ref[...].astype(jnp.float32) - b)

    @pl.when(base + block_elems > n)           # boundary / overshoot block
    def _tail():
        row_i = lax.broadcasted_iota(jnp.int32, (block_rows, lanes), 0)
        lane_i = lax.broadcasted_iota(jnp.int32, (block_rows, lanes), 1)
        valid = (base + row_i * lanes + lane_i) < n
        u = jnp.where(valid, x_ref[...].astype(jnp.float32) - a, 0.0)
        v = jnp.where(valid, y_ref[...].astype(jnp.float32) - b, 0.0)
        _accumulate(u, v)

    @pl.when(s == pl.num_programs(1) - 1)
    def _finalize():
        out_ref[...] = acc_ref[...][None, :, :]


def ccc_loss(x: jax.Array, y: jax.Array, eps: float = 1e-8,
             *, block_rows: int | None = None, num_shards: int = 2) -> jax.Array:
    """Computes 1 - CCC for x, y of shape (n, 1) (same semantics as the torch module)."""
    assert x.shape == y.shape
    n = int(x.size)
    assert n >= 2, "CCC needs at least 2 samples (unbiased std)."

    if x.dtype not in (jnp.float32, jnp.bfloat16):
        x = x.astype(jnp.float32)
        y = y.astype(jnp.float32)
    itemsize = jnp.dtype(x.dtype).itemsize
    sublane = 8 * (4 // itemsize)          # 8 for f32, 16 for bf16

    xf = x.reshape(-1)
    yf = y.reshape(-1)

    # Shift values (first elements) for numerically stabler shifted moments.
    shift = jnp.stack([xf[0], yf[0]]).astype(jnp.float32)
    n_arr = jnp.array([n], dtype=jnp.int32)

    rows = _round_up(pl.cdiv(n, _LANES), sublane)
    padded = rows * _LANES
    if padded != n:
        # Pad only to the next sublane*lane multiple (<= 2047 elems), never to
        # a block multiple; padded elements are masked out in the kernel.
        xf = jnp.pad(xf, (0, padded - n))
        yf = jnp.pad(yf, (0, padded - n))
    x2d = xf.reshape(rows, _LANES)
    y2d = yf.reshape(rows, _LANES)

    if block_rows is None:
        block_rows = _default_block_rows(itemsize, sublane)
    block_rows = max(sublane, _round_up(int(block_rows), sublane))
    block_rows = min(block_rows, rows)

    num_blocks = pl.cdiv(rows, block_rows)
    shards = max(1, min(int(num_shards), num_blocks))
    steps = pl.cdiv(num_blocks, shards)

    def _in_index(c, s, n_sref, shift_sref):
        return (jnp.minimum(c * steps + s, num_blocks - 1), 0)

    def _out_index(c, s, n_sref, shift_sref):
        return (c, 0, 0)

    block_bytes = block_rows * _LANES * itemsize
    vmem_limit = int(min(max(4 * block_bytes + (4 << 20), 16 << 20), 48 << 20))

    cost = pl.CostEstimate(
        flops=12 * n, transcendentals=0,
        bytes_accessed=2 * n * itemsize + shards * 8 * _LANES * 4)

    partials = pl.pallas_call(
        _ccc_partial_moments_kernel,
        out_shape=jax.ShapeDtypeStruct((shards, 8, _LANES), jnp.float32),
        grid_spec=pltpu.PrefetchScalarGridSpec(
            num_scalar_prefetch=2,
            grid=(shards, steps),
            in_specs=[
                pl.BlockSpec((block_rows, _LANES), _in_index),
                pl.BlockSpec((block_rows, _LANES), _in_index),
            ],
            out_specs=pl.BlockSpec((1, 8, _LANES), _out_index),
            scratch_shapes=[pltpu.VMEM((8, _LANES), jnp.float32)],
        ),
        compiler_params=pltpu.CompilerParams(
            dimension_semantics=("parallel", "arbitrary"),
            vmem_limit_bytes=vmem_limit,
        ),
        cost_estimate=cost,
    )(n_arr, shift, x2d, y2d)

    # Tiny scalar epilogue (ordinary XLA ops) combining per-shard lane sums.
    m = jnp.sum(partials, axis=(0, 2))            # (8,)
    su, sv, suu, svv, suv = m[0], m[1], m[2], m[3], m[4]
    a, b = shift[0], shift[1]

    inv_n = jnp.float32(1.0 / n)
    u_m = su * inv_n
    v_m = sv * inv_n
    x_m = a + u_m
    y_m = b + v_m

    # centered sums are shift-invariant (clamped against round-off)
    sum_vx2 = jnp.maximum(suu - su * u_m, 0.0)
    sum_vy2 = jnp.maximum(svv - sv * v_m, 0.0)
    sum_vxvy = suv - su * v_m

    rho = sum_vxvy / (jnp.sqrt(sum_vx2) * jnp.sqrt(sum_vy2) + jnp.float32(eps))
    inv_nm1 = jnp.float32(1.0 / (n - 1))          # torch.std is unbiased (ddof=1)
    x_s = jnp.sqrt(sum_vx2 * inv_nm1)
    y_s = jnp.sqrt(sum_vy2 * inv_nm1)

    ccc = (2.0 * rho * x_s * y_s) / (x_s * x_s + y_s * y_s + (x_m - y_m) ** 2)
    return 1.0 - ccc


def _ccc_loss_ref(x: jax.Array, y: jax.Array, eps: float = 1e-8) -> jax.Array:
    """Pure-JAX reference mirroring the torch code, for a sanity check."""
    x = x.astype(jnp.float32)
    y = y.astype(jnp.float32)
    vx = x - jnp.mean(x)
    vy = y - jnp.mean(y)
    rho = jnp.sum(vx * vy) / (
        jnp.sqrt(jnp.sum(vx ** 2)) * jnp.sqrt(jnp.sum(vy ** 2)) + eps)
    x_m = jnp.mean(x)
    y_m = jnp.mean(y)
    x_s = jnp.std(x, ddof=1)
    y_s = jnp.std(y, ddof=1)
    ccc = 2 * rho * x_s * y_s / (x_s ** 2 + y_s ** 2 + (x_m - y_m) ** 2)
    return 1 - ccc


if __name__ == "__main__":
    key = jax.random.PRNGKey(0)
    kx, ky = jax.random.split(key)

    # (n, 1) inputs as the torch module expects; n not a multiple of 128
    # exercises the in-kernel tail mask.
    n = 333
    x = jax.random.normal(kx, (n, 1), dtype=jnp.float32)
    y = 0.7 * x + 0.3 * jax.random.normal(ky, (n, 1), dtype=jnp.float32)
    loss = ccc_loss(x, y)
    jax.block_until_ready(loss)
    ref = _ccc_loss_ref(x, y)
    assert jnp.allclose(loss, ref, atol=1e-5, rtol=1e-4), (loss, ref)

    # Multi-block, 2-shard grid path with non-zero mean data (shifted moments)
    # and a partial / overshoot last block.
    n2 = 5000
    x2 = 3.0 + jax.random.normal(kx, (n2, 1), dtype=jnp.float32)
    y2 = 2.0 + 0.5 * (x2 - 3.0) + 0.5 * jax.random.normal(ky, (n2, 1), dtype=jnp.float32)
    loss2 = ccc_loss(x2, y2, block_rows=16)
    jax.block_until_ready(loss2)
    ref2 = _ccc_loss_ref(x2, y2)
    assert jnp.allclose(loss2, ref2, atol=1e-5, rtol=1e-4), (loss2, ref2)

    print("KERNEL_OK")
</pallas_src>

<mosaic_0001>
module attributes {stable_mosaic.version = 11 : i64} {
  func.func @_ccc_partial_moments_kernel(%arg0: i32, %arg1: i32, %arg2: memref<1xi32, #tpu.memory_space<smem>>, %arg3: memref<2xf32, #tpu.memory_space<smem>>, %arg4: memref<8x128xf32, #tpu.memory_space<vmem>>, %arg5: memref<8x128xf32, #tpu.memory_space<vmem>>, %arg6: memref<1x8x128xf32, #tpu.memory_space<vmem>>, %arg7: memref<8x128xf32, #tpu.memory_space<vmem>>) attributes {dimension_semantics = [#tpu.dimension_semantics<parallel>, #tpu.dimension_semantics<arbitrary>], iteration_bounds = array<i64: 1, 1>, scalar_prefetch = 2 : i64, scratch_operands = 1 : i64, tpu.core_type = #tpu.core_type<tc>, window_params = [{transform_indices = @transform_0, window_bounds = array<i64: 8, 128>}, {transform_indices = @transform_1, window_bounds = array<i64: 8, 128>}, {transform_indices = @transform_2, window_bounds = array<i64: 1, 8, 128>}]} {
    %c0_i32 = arith.constant 0 : i32
    %0 = arith.cmpi eq, %arg1, %c0_i32 : i32
    %1 = arith.extui %0 : i1 to i32
    %c0_i32_0 = arith.constant 0 : i32
    %2 = arith.cmpi ne, %1, %c0_i32_0 : i32
    scf.if %2 {
      %cst = arith.constant 0.000000e+00 : f32
      %20 = vector.broadcast %cst : f32 to vector<8x128xf32>
      %c0_8 = arith.constant 0 : index
      %c0_9 = arith.constant 0 : index
      %21 = vector.load %arg7[%c0_8, %c0_9] : memref<8x128xf32, #tpu.memory_space<vmem>>, vector<8x128xf32>
      tpu.vector_store %arg7[%c0_8, %c0_9], %20 {strides = array<i32>} : memref<8x128xf32, #tpu.memory_space<vmem>>, vector<8x128xf32>,
    } else {
    }
    %c0 = arith.constant 0 : index
    %3 = memref.load %arg2[%c0] : memref<1xi32, #tpu.memory_space<smem>>
    %c0_1 = arith.constant 0 : index
    %4 = memref.load %arg3[%c0_1] : memref<2xf32, #tpu.memory_space<smem>>
    %c1 = arith.constant 1 : index
    %5 = memref.load %arg3[%c1] : memref<2xf32, #tpu.memory_space<smem>>
    %c1_i32 = arith.constant 1 : i32
    %6 = arith.muli %arg0, %c1_i32 : i32
    %7 = arith.addi %6, %arg1 : i32
    %c1024_i32 = arith.constant 1024 : i32
    %8 = arith.muli %7, %c1024_i32 : i32
    %c1024_i32_2 = arith.constant 1024 : i32
    %9 = arith.addi %8, %c1024_i32_2 : i32
    %10 = arith.cmpi sle, %9, %3 : i32
    %11 = arith.extui %10 : i1 to i32
    %c0_i32_3 = arith.constant 0 : i32
    %12 = arith.cmpi ne, %11, %c0_i32_3 : i32
    scf.if %12 {
      %c0_8 = arith.constant 0 : index
      %c0_9 = arith.constant 0 : index
      %20 = vector.load %arg4[%c0_8, %c0_9] : memref<8x128xf32, #tpu.memory_space<vmem>>, vector<8x128xf32>
      %21 = vector.broadcast %4 : f32 to vector<8x128xf32>
      %22 = arith.subf %20, %21 : vector<8x128xf32>
      %c0_10 = arith.constant 0 : index
      %c0_11 = arith.constant 0 : index
      %23 = vector.load %arg5[%c0_10, %c0_11] : memref<8x128xf32, #tpu.memory_space<vmem>>, vector<8x128xf32>
      %24 = vector.broadcast %5 : f32 to vector<8x128xf32>
      %25 = arith.subf %23, %24 : vector<8x128xf32>
      %c0_12 = arith.constant 0 : index
      %c0_13 = arith.constant 0 : index
      %26 = vector.load %arg7[%c0_12, %c0_13] : memref<8x128xf32, #tpu.memory_space<vmem>>, vector<1x128xf32>
      %cst = arith.constant dense<0.000000e+00> : vector<128xf32>
      %27 = vector.multi_reduction <add>, %22, %cst [0] : vector<8x128xf32> to vector<128xf32>
      %28 = vector.shape_cast %27 : vector<128xf32> to vector<1x128xf32>
      %29 = arith.addf %26, %28 : vector<1x128xf32>
      %c0_14 = arith.constant 0 : index
      %c0_15 = arith.constant 0 : index
      %30 = vector.load %arg7[%c0_14, %c0_15] : memref<8x128xf32, #tpu.memory_space<vmem>>, vector<1x128xf32>
      tpu.vector_store %arg7[%c0_14, %c0_15], %29 {strides = array<i32>} : memref<8x128xf32, #tpu.memory_space<vmem>>, vector<1x128xf32>,
      %c1_16 = arith.constant 1 : index
      %c0_17 = arith.constant 0 : index
      %31 = vector.load %arg7[%c1_16, %c0_17] : memref<8x128xf32, #tpu.memory_space<vmem>>, vector<1x128xf32>
      %cst_18 = arith.constant dense<0.000000e+00> : vector<128xf32>
      %32 = vector.multi_reduction <add>, %25, %cst_18 [0] : vector<8x128xf32> to vector<128xf32>
      %33 = vector.shape_cast %32 : vector<128xf32> to vector<1x128xf32>
      %34 = arith.addf %31, %33 : vector<1x128xf32>
      %c1_19 = arith.constant 1 : index
      %c0_20 = arith.constant 0 : index
      %35 = vector.load %arg7[%c1_19, %c0_20] : memref<8x128xf32, #tpu.memory_space<vmem>>, vector<1x128xf32>
      tpu.vector_store %arg7[%c1_19, %c0_20], %34 {strides = array<i32>} : memref<8x128xf32, #tpu.memory_space<vmem>>, vector<1x128xf32>,
      %c2 = arith.constant 2 : index
      %c0_21 = arith.constant 0 : index
      %36 = vector.load %arg7[%c2, %c0_21] : memref<8x128xf32, #tpu.memory_space<vmem>>, vector<1x128xf32>
      %37 = arith.mulf %22, %22 : vector<8x128xf32>
      %cst_22 = arith.constant dense<0.000000e+00> : vector<128xf32>
      %38 = vector.multi_reduction <add>, %37, %cst_22 [0] : vector<8x128xf32> to vector<128xf32>
      %39 = vector.shape_cast %38 : vector<128xf32> to vector<1x128xf32>
      %40 = arith.addf %36, %39 : vector<1x128xf32>
      %c2_23 = arith.constant 2 : index
      %c0_24 = arith.constant 0 : index
      %41 = vector.load %arg7[%c2_23, %c0_24] : memref<8x128xf32, #tpu.memory_space<vmem>>, vector<1x128xf32>
      tpu.vector_store %arg7[%c2_23, %c0_24], %40 {strides = array<i32>} : memref<8x128xf32, #tpu.memory_space<vmem>>, vector<1x128xf32>,
      %c3 = arith.constant 3 : index
      %c0_25 = arith.constant 0 : index
      %42 = vector.load %arg7[%c3, %c0_25] : memref<8x128xf32, #tpu.memory_space<vmem>>, vector<1x128xf32>
      %43 = arith.mulf %25, %25 : vector<8x128xf32>
      %cst_26 = arith.constant dense<0.000000e+00> : vector<128xf32>
      %44 = vector.multi_reduction <add>, %43, %cst_26 [0] : vector<8x128xf32> to vector<128xf32>
      %45 = vector.shape_cast %44 : vector<128xf32> to vector<1x128xf32>
      %46 = arith.addf %42, %45 : vector<1x128xf32>
      %c3_27 = arith.constant 3 : index
      %c0_28 = arith.constant 0 : index
      %47 = vector.load %arg7[%c3_27, %c0_28] : memref<8x128xf32, #tpu.memory_space<vmem>>, vector<1x128xf32>
      tpu.vector_store %arg7[%c3_27, %c0_28], %46 {strides = array<i32>} : memref<8x128xf32, #tpu.memory_space<vmem>>, vector<1x128xf32>,
      %c4 = arith.constant 4 : index
      %c0_29 = arith.constant 0 : index
      %48 = vector.load %arg7[%c4, %c0_29] : memref<8x128xf32, #tpu.memory_space<vmem>>, vector<1x128xf32>
      %49 = arith.mulf %22, %25 : vector<8x128xf32>
      %cst_30 = arith.constant dense<0.000000e+00> : vector<128xf32>
      %50 = vector.multi_reduction <add>, %49, %cst_30 [0] : vector<8x128xf32> to vector<128xf32>
      %51 = vector.shape_cast %50 : vector<128xf32> to vector<1x128xf32>
      %52 = arith.addf %48, %51 : vector<1x128xf32>
      %c4_31 = arith.constant 4 : index
      %c0_32 = arith.constant 0 : index
      %53 = vector.load %arg7[%c4_31, %c0_32] : memref<8x128xf32, #tpu.memory_space<vmem>>, vector<1x128xf32>
      tpu.vector_store %arg7[%c4_31, %c0_32], %52 {strides = array<i32>} : memref<8x128xf32, #tpu.memory_space<vmem>>, vector<1x128xf32>,
    } else {
    }
    %c1024_i32_4 = arith.constant 1024 : i32
    %13 = arith.addi %8, %c1024_i32_4 : i32
    %14 = arith.cmpi sgt, %13, %3 : i32
    %15 = arith.extui %14 : i1 to i32
    %c0_i32_5 = arith.constant 0 : i32
    %16 = arith.cmpi ne, %15, %c0_i32_5 : i32
    scf.if %16 {
      %20 = tpu.iota {dimensions = array<i32: 0>} : vector<8x128xi32>
      %21 = tpu.iota {dimensions = array<i32: 1>} : vector<8x128xi32>
      %c128_i32 = arith.constant 128 : i32
      %22 = vector.broadcast %c128_i32 : i32 to vector<8x128xi32>
      %23 = arith.muli %20, %22 : vector<8x128xi32>
      %24 = vector.broadcast %8 : i32 to vector<8x128xi32>
      %25 = arith.addi %24, %23 : vector<8x128xi32>
      %26 = arith.addi %25, %21 : vector<8x128xi32>
      %27 = vector.broadcast %3 : i32 to vector<8x128xi32>
      %28 = arith.cmpi slt, %26, %27 : vector<8x128xi32>
      %c0_8 = arith.constant 0 : index
      %c0_9 = arith.constant 0 : index
      %29 = vector.load %arg4[%c0_8, %c0_9] : memref<8x128xf32, #tpu.memory_space<vmem>>, vector<8x128xf32>
      %30 = vector.broadcast %4 : f32 to vector<8x128xf32>
      %31 = arith.subf %29, %30 : vector<8x128xf32>
      %cst = arith.constant 0.000000e+00 : f32
      %32 = vector.broadcast %cst : f32 to vector<8x128xf32>
      %33 = arith.select %28, %31, %32 : vector<8x128xi1>, vector<8x128xf32>
      %c0_10 = arith.constant 0 : index
      %c0_11 = arith.constant 0 : index
      %34 = vector.load %arg5[%c0_10, %c0_11] : memref<8x128xf32, #tpu.memory_space<vmem>>, vector<8x128xf32>
      %35 = vector.broadcast %5 : f32 to vector<8x128xf32>
      %36 = arith.subf %34, %35 : vector<8x128xf32>
      %cst_12 = arith.constant 0.000000e+00 : f32
      %37 = vector.broadcast %cst_12 : f32 to vector<8x128xf32>
      %38 = arith.select %28, %36, %37 : vector<8x128xi1>, vector<8x128xf32>
      %c0_13 = arith.constant 0 : index
      %c0_14 = arith.constant 0 : index
      %39 = vector.load %arg7[%c0_13, %c0_14] : memref<8x128xf32, #tpu.memory_space<vmem>>, vector<1x128xf32>
      %cst_15 = arith.constant dense<0.000000e+00> : vector<128xf32>
      %40 = vector.multi_reduction <add>, %33, %cst_15 [0] : vector<8x128xf32> to vector<128xf32>
      %41 = vector.shape_cast %40 : vector<128xf32> to vector<1x128xf32>
      %42 = arith.addf %39, %41 : vector<1x128xf32>
      %c0_16 = arith.constant 0 : index
      %c0_17 = arith.constant 0 : index
      %43 = vector.load %arg7[%c0_16, %c0_17] : memref<8x128xf32, #tpu.memory_space<vmem>>, vector<1x128xf32>
      tpu.vector_store %arg7[%c0_16, %c0_17], %42 {strides = array<i32>} : memref<8x128xf32, #tpu.memory_space<vmem>>, vector<1x128xf32>,
      %c1_18 = arith.constant 1 : index
      %c0_19 = arith.constant 0 : index
      %44 = vector.load %arg7[%c1_18, %c0_19] : memref<8x128xf32, #tpu.memory_space<vmem>>, vector<1x128xf32>
      %cst_20 = arith.constant dense<0.000000e+00> : vector<128xf32>
      %45 = vector.multi_reduction <add>, %38, %cst_20 [0] : vector<8x128xf32> to vector<128xf32>
      %46 = vector.shape_cast %45 : vector<128xf32> to vector<1x128xf32>
      %47 = arith.addf %44, %46 : vector<1x128xf32>
      %c1_21 = arith.constant 1 : index
      %c0_22 = arith.constant 0 : index
      %48 = vector.load %arg7[%c1_21, %c0_22] : memref<8x128xf32, #tpu.memory_space<vmem>>, vector<1x128xf32>
      tpu.vector_store %arg7[%c1_21, %c0_22], %47 {strides = array<i32>} : memref<8x128xf32, #tpu.memory_space<vmem>>, vector<1x128xf32>,
      %c2 = arith.constant 2 : index
      %c0_23 = arith.constant 0 : index
      %49 = vector.load %arg7[%c2, %c0_23] : memref<8x128xf32, #tpu.memory_space<vmem>>, vector<1x128xf32>
      %50 = arith.mulf %33, %33 : vector<8x128xf32>
      %cst_24 = arith.constant dense<0.000000e+00> : vector<128xf32>
      %51 = vector.multi_reduction <add>, %50, %cst_24 [0] : vector<8x128xf32> to vector<128xf32>
      %52 = vector.shape_cast %51 : vector<128xf32> to vector<1x128xf32>
      %53 = arith.addf %49, %52 : vector<1x128xf32>
      %c2_25 = arith.constant 2 : index
      %c0_26 = arith.constant 0 : index
      %54 = vector.load %arg7[%c2_25, %c0_26] : memref<8x128xf32, #tpu.memory_space<vmem>>, vector<1x128xf32>
      tpu.vector_store %arg7[%c2_25, %c0_26], %53 {strides = array<i32>} : memref<8x128xf32, #tpu.memory_space<vmem>>, vector<1x128xf32>,
      %c3 = arith.constant 3 : index
      %c0_27 = arith.constant 0 : index
      %55 = vector.load %arg7[%c3, %c0_27] : memref<8x128xf32, #tpu.memory_space<vmem>>, vector<1x128xf32>
      %56 = arith.mulf %38, %38 : vector<8x128xf32>
      %cst_28 = arith.constant dense<0.000000e+00> : vector<128xf32>
      %57 = vector.multi_reduction <add>, %56, %cst_28 [0] : vector<8x128xf32> to vector<128xf32>
      %58 = vector.shape_cast %57 : vector<128xf32> to vector<1x128xf32>
      %59 = arith.addf %55, %58 : vector<1x128xf32>
      %c3_29 = arith.constant 3 : index
      %c0_30 = arith.constant 0 : index
      %60 = vector.load %arg7[%c3_29, %c0_30] : memref<8x128xf32, #tpu.memory_space<vmem>>, vector<1x128xf32>
      tpu.vector_store %arg7[%c3_29, %c0_30], %59 {strides = array<i32>} : memref<8x128xf32, #tpu.memory_space<vmem>>, vector<1x128xf32>,
      %c4 = arith.constant 4 : index
      %c0_31 = arith.constant 0 : index
      %61 = vector.load %arg7[%c4, %c0_31] : memref<8x128xf32, #tpu.memory_space<vmem>>, vector<1x128xf32>
      %62 = arith.mulf %33, %38 : vector<8x128xf32>
      %cst_32 = arith.constant dense<0.000000e+00> : vector<128xf32>
      %63 = vector.multi_reduction <add>, %62, %cst_32 [0] : vector<8x128xf32> to vector<128xf32>
      %64 = vector.shape_cast %63 : vector<128xf32> to vector<1x128xf32>
      %65 = arith.addf %61, %64 : vector<1x128xf32>
      %c4_33 = arith.constant 4 : index
      %c0_34 = arith.constant 0 : index
      %66 = vector.load %arg7[%c4_33, %c0_34] : memref<8x128xf32, #tpu.memory_space<vmem>>, vector<1x128xf32>
      tpu.vector_store %arg7[%c4_33, %c0_34], %65 {strides = array<i32>} : memref<8x128xf32, #tpu.memory_space<vmem>>, vector<1x128xf32>,
    } else {
    }
    %c0_i32_6 = arith.constant 0 : i32
    %17 = arith.cmpi eq, %arg1, %c0_i32_6 : i32
    %18 = arith.extui %17 : i1 to i32
    %c0_i32_7 = arith.constant 0 : i32
    %19 = arith.cmpi ne, %18, %c0_i32_7 : i32
    scf.if %19 {
      %c0_8 = arith.constant 0 : index
      %c0_9 = arith.constant 0 : index
      %20 = vector.load %arg7[%c0_8, %c0_9] : memref<8x128xf32, #tpu.memory_space<vmem>>, vector<8x128xf32>
      %21 = vector.shape_cast %20 : vector<8x128xf32> to vector<1x8x128xf32>
      %c0_10 = arith.constant 0 : index
      %c0_11 = arith.constant 0 : index
      %c0_12 = arith.constant 0 : index
      %22 = vector.load %arg6[%c0_10, %c0_11, %c0_12] : memref<1x8x128xf32, #tpu.memory_space<vmem>>, vector<1x8x128xf32>
      tpu.vector_store %arg6[%c0_10, %c0_11, %c0_12], %21 {strides = array<i32>} : memref<1x8x128xf32, #tpu.memory_space<vmem>>, vector<1x8x128xf32>,
    } else {
    }
    return
  }
  func.func @transform_0(%arg0: i32, %arg1: i32, %arg2: memref<1xi32, #tpu.memory_space<smem>>, %arg3: memref<2xf32, #tpu.memory_space<smem>>) -> (i32, i32) {
    %c1_i32 = arith.constant 1 : i32
    %0 = arith.muli %arg0, %c1_i32 : i32
    %1 = arith.addi %0, %arg1 : i32
    %c0_i32 = arith.constant 0 : i32
    %2 = arith.minsi %1, %c0_i32 : i32
    %c0_i32_0 = arith.constant 0 : i32
    %c0_i32_1 = arith.constant 0 : i32
    return %2, %c0_i32_0 : i32, i32
  }
  func.func @transform_1(%arg0: i32, %arg1: i32, %arg2: memref<1xi32, #tpu.memory_space<smem>>, %arg3: memref<2xf32, #tpu.memory_space<smem>>) -> (i32, i32) {
    %c1_i32 = arith.constant 1 : i32
    %0 = arith.muli %arg0, %c1_i32 : i32
    %1 = arith.addi %0, %arg1 : i32
    %c0_i32 = arith.constant 0 : i32
    %2 = arith.minsi %1, %c0_i32 : i32
    %c0_i32_0 = arith.constant 0 : i32
    %c0_i32_1 = arith.constant 0 : i32
    return %2, %c0_i32_0 : i32, i32
  }
  func.func @transform_2(%arg0: i32, %arg1: i32, %arg2: memref<1xi32, #tpu.memory_space<smem>>, %arg3: memref<2xf32, #tpu.memory_space<smem>>) -> (i32, i32, i32) {
    %c0_i32 = arith.constant 0 : i32
    %c0_i32_0 = arith.constant 0 : i32
    %c0_i32_1 = arith.constant 0 : i32
    return %arg0, %c0_i32, %c0_i32_0 : i32, i32, i32
  }
}

</mosaic_0001>

<bundles_post_ra>
// kernel: tpu_custom_call.1
= control target key start
LH: loop header
LB: loop body
LE: loop exit
PB: predicated region body
PF: predicated region fallthrough
CT: control target
= control target key end

     0   :  { %s385_s0 = inlined_call_operand.<no memory space> [shape: s32[1], index: 0, kind: input, shape index: {}]   ;;  %s386_s1 = inlined_call_operand.vmem [shape: f32[2], index: 1, kind: input, shape index: {}]   ;;  %s387_s2 = inlined_call_operand.hbm [shape: f32[8,128], index: 2, kind: input, shape index: {}]   ;;  %s388_s3 = inlined_call_operand.vmem [shape: f32[8,128], index: 3, kind: input, shape index: {}]   ;;  %s389_s4 = inlined_call_operand.hbm [shape: f32[1,8,128], index: 4, kind: output, shape index: {}]  }
   0x1   :  { %s10_s17 = sshll.u32 %s386_s1, 4  ;;  %s11_s17 = int_to_ptr.vmem [resolvable:$true] %s10_s17 }
   0x2   :  { %s244_s18 = scalar_lea.vmem %s11_s17, 16  ;;  %p249_p1 = scmp.lt.s32.totalorder %s11_s17, %s11_s17 }
   0x3   :  { %p245_p0 = scmp.ne.s32.totalorder %s11_s17, %s244_s18  ;;  %p250_p2 = scmp.lt.s32.totalorder %s244_s18, %s244_s18 }
   0x5   :  { %p251_p3 = por %p250_p2, %p249_p1 }
   0x7   :  { %p252_p4 = pnand %p251_p3, %p245_p0 }
   0x9   :  { %255 = shalt.err (!%p252_p4)  }
   0xa   :  { %s306_s19 = smov [#allocation5]  }
   0xb   :  { %13 = dma.vmem_to_smem %s11_s17, 16, %s306_s19, [#allocation3] }
   0xc   :  { %300 = dma.done.wait [#allocation3], 16 }
   0xd   :  { %301 = vsyncadd [#allocation3], 4294967280 }
   0xe   :  { %15 = sfence }
   0xf   :  { %16 = vsyncpa [#allocation7], 0 }
  0x10   :  { %17 = vsyncpa [#allocation8], 0  ;;  %s307_s20 = smov [#allocation6]   ;;  %s256_s23 = scalar_lea.hbm %s387_s2, 128 }
  0x11   :  { %s29_s21 = sshll.u32 %s307_s20, 4  ;;  %p257_p5 = scmp.ne.s32.totalorder %s387_s2, %s256_s23  ;;  %s30_s21 = int_to_ptr.vmem [resolvable:$true] %s29_s21 }
  0x12   :  { %p260_p6 = scmp.lt.u32.totalorder %s256_s23, %s387_s2 }
  0x14   :  { %p262_p7 = pnand %p260_p6, %p257_p5 }
  0x16   :  { %265 = shalt.err (!%p262_p7)
}
  0x17   :  { %s266_s28 = scalar_lea.vmem %s30_s21, 128  ;;  %p271_p9 = scmp.lt.s32.totalorder %s30_s21, %s30_s21 }
  0x18   :  { %p267_p8 = scmp.ne.s32.totalorder %s30_s21, %s266_s28  ;;  %p272_p10 = scmp.lt.s32.totalorder %s266_s28, %s266_s28 }
  0x1a   :  { %p273_p11 = por %p272_p10, %p271_p9 }
  0x1c   :  { %p274_p12 = pnand %p273_p11, %p267_p8 }
  0x1e   :  { %277 = shalt.err (!%p274_p12)
}
  0x1f   :  { %32 = dma.hbm_to_vmem [thread:$0]  %s387_s2, 128, %s30_s21, [#allocation7]  }
  0x20   :  { %302 = dma.done.wait [#allocation7], 128  }
  0x21   :  { %303 = vsyncadd [#allocation7], 4294967168  ;;  %s350_s5 = sld [smem:[#allocation5]]  ;;  %s352_s6 = sld [smem:[#allocation5 + $0x1]]  ;;  %v308_v0 = vmov 0.0  }
  0x22   :  { %72 = vst [vmem:[#allocation2] sm:$0xff] %v308_v0  ;;  %p237_p13 = scmp.lt.s32.totalorder %s385_s0, 1024 }
  0x23   :  { %v83_v1 = vld [vmem:[#allocation6] sm:$0xff] (!%p237_p13)  ;;  %v86_v3 = vld [vmem:[%s388_s3] sm:$0xff] (!%p237_p13) }
  0x24   :  { %82 = sbr.rel (%p237_p13) target bundleno = 60 (0x3c), region = 21 }
  0x27   :  { %v84_v2 = vstv (!%p237_p13), %s350_s5  ;;  %v87_v4 = vstv (!%p237_p13), %s352_s6 }
  0x28   :  { %v85_v5 = vsub.f32 (!%p237_p13), %v83_v1, %v84_v2  ;;  %v88_v6 = vsub.f32 (!%p237_p13), %v86_v3, %v87_v4 }
  0x29   :  { %v89_v31 = vld [vmem:[#allocation2] sm:$0x1] (!%p237_p13)  ;;  %v98_v32 = vld [vmem:[#allocation2 + $0x1] sm:$0x1] (!%p237_p13)  ;;  %v107_v38 = vld [vmem:[#allocation2 + $0x2] sm:$0x1] (!%p237_p13) }
  0x2a   :  { %v90_v7 = vrot.slane (!%p237_p13), %v85_v5, 4  ;;  %v99_v8 = vrot.slane (!%p237_p13), %v88_v6, 4  ;;  %v108_v9 = vmul.f32 (!%p237_p13), %v85_v5, %v85_v5  ;;  %v118_v10 = vmul.f32 (!%p237_p13), %v88_v6, %v88_v6  ;;  %v117_v39 = vld [vmem:[#allocation2 + $0x3] sm:$0x1] (!%p237_p13)  ;;  %v127_v45 = vld [vmem:[#allocation2 + $0x4] sm:$0x1] (!%p237_p13) }
  0x2b   :  { %v128_v11 = vmul.f32 %v88_v6, %v85_v5 }
  0x2c   :  { %v91_v12 = vadd.f32 %v90_v7, %v85_v5  ;;  %v100_v13 = vadd.f32 %v99_v8, %v88_v6  ;;  %v109_v14 = vrot.slane %v108_v9, 4  ;;  %v119_v15 = vrot.slane %v118_v10, 4 }
  0x2d   :  { %v129_v16 = vrot.slane %v128_v11, 4 }
  0x2e   :  { %v92_v17 = vrot.slane %v91_v12, 2  ;;  %v101_v18 = vrot.slane %v100_v13, 2  ;;  %v110_v19 = vadd.f32 %v109_v14, %v108_v9  ;;  %v120_v20 = vadd.f32 %v119_v15, %v118_v10 }
  0x2f   :  { %v130_v21 = vadd.f32 %v129_v16, %v128_v11 }
  0x30   :  { %v93_v22 = vadd.f32 %v92_v17, %v91_v12  ;;  %v102_v23 = vadd.f32 %v101_v18, %v100_v13  ;;  %v111_v24 = vrot.slane %v110_v19, 2  ;;  %v121_v25 = vrot.slane %v120_v20, 2 }
  0x31   :  { %v131_v26 = vrot.slane %v130_v21, 2 }
  0x32   :  { %v94_v27 = vrot.slane %v93_v22, 1  ;;  %v103_v28 = vrot.slane %v102_v23, 1  ;;  %v112_v29 = vadd.f32 %v111_v24, %v110_v19  ;;  %v122_v30 = vadd.f32 %v121_v25, %v120_v20 }
  0x33   :  { %v132_v33 = vadd.f32 %v131_v26, %v130_v21 }
  0x34   :  { %v95_v34 = vadd.f32 %v94_v27, %v93_v22  ;;  %v104_v35 = vadd.f32 %v103_v28, %v102_v23  ;;  %v113_v36 = vrot.slane %v112_v29, 1  ;;  %v123_v37 = vrot.slane %v122_v30, 1 }
  0x35   :  { %v133_v40 = vrot.slane %v132_v33, 1 }
  0x36   :  { %v96_v41 = vadd.f32 %v95_v34, %v89_v31  ;;  %v105_v42 = vadd.f32 %v104_v35, %v98_v32  ;;  %v114_v43 = vadd.f32 %v113_v36, %v112_v29  ;;  %v124_v44 = vadd.f32 %v123_v37, %v122_v30 }
  0x37   :  { %v134_v46 = vadd.f32 %v133_v40, %v132_v33 }
  0x38   :  { %97 = vst [vmem:[#allocation2] sm:$0x1] %v96_v41  ;;  %106 = vst [vmem:[#allocation2 + $0x1] sm:$0x1] %v105_v42  ;;  %v115_v47 = vadd.f32 %v114_v43, %v107_v38  ;;  %v125_v48 = vadd.f32 %v124_v44, %v117_v39 }
  0x39   :  { %v135_v49 = vadd.f32 %v134_v46, %v127_v45 }
  0x3a   :  { %116 = vst [vmem:[#allocation2 + $0x2] sm:$0x1] %v115_v47  ;;  %126 = vst [vmem:[#allocation2 + $0x3] sm:$0x1] %v125_v48 }
  0x3b   :  { %136 = vst [vmem:[#allocation2 + $0x4] sm:$0x1] %v135_v49 }
  0x3c PF:  { %p239_p0 = scmp.ge.s32.totalorder %s385_s0, 1024 }
  0x3d   :  { %v141_v50 = vlaneseq (!%p239_p0)  ;;  %v151_v53 = vld [vmem:[#allocation6] sm:$0xff] (!%p239_p0)  ;;  %v152_v54 = vstv (!%p239_p0), %s350_s5  ;;  %v155_v55 = vld [vmem:[%s388_s3] sm:$0xff] (!%p239_p0)  ;;  %v156_v56 = vstv (!%p239_p0), %s352_s6  ;;  %v149_v58 = vstv (!%p239_p0), %s385_s0 }
  0x3e   :  { %140 = sbr.rel (%p239_p0) target bundleno = 89 (0x59), region = 25  ;;  %v153_v59 = vsub.f32 (!%p239_p0), %v151_v53, %v152_v54  ;;  %v157_v60 = vsub.f32 (!%p239_p0), %v155_v55, %v156_v56 }
  0x3f   :  { %v142_v51 = vshrl.u32 (!%p239_p0), %v141_v50, 7  ;;  %v144_v52 = vand.u32 (!%p239_p0), 127, %v141_v50  ;;  %v159_v24 = vld [vmem:[#allocation2] sm:$0x1] (!%p239_p0)  ;;  %v168_v25 = vld [vmem:[#allocation2 + $0x1] sm:$0x1] (!%p239_p0) }
  0x41   :  { %v145_v57 = vmul.u32 (!%p239_p0), 128, %v142_v51  ;;  %v177_v31 = vld [vmem:[#allocation2 + $0x2] sm:$0x1] (!%p239_p0)  ;;  %v187_v32 = vld [vmem:[#allocation2 + $0x3] sm:$0x1] (!%p239_p0) }
  0x42   :  { %v197_v38 = vld [vmem:[#allocation2 + $0x4] sm:$0x1] (!%p239_p0) }
  0x43   :  { %v148_v61 = vadd.s32 (!%p239_p0), %v145_v57, %v144_v52 }
  0x45   :  { %vm150_vm0 = vcmp.lt.s32.totalorder %v148_v61, %v149_v58 }
  0x46   :  { %v154_v62 = vsel %vm150_vm0, %v153_v59, 0.0  ;;  %v158_v63 = vsel %vm150_vm0, %v157_v60, 0.0 }
  0x47   :  { %v160_v0 = vrot.slane %v154_v62, 4  ;;  %v169_v1 = vrot.slane %v158_v63, 4  ;;  %v178_v2 = vmul.f32 %v154_v62, %v154_v62  ;;  %v188_v3 = vmul.f32 %v158_v63, %v158_v63 }
  0x48   :  { %v198_v4 = vmul.f32 %v158_v63, %v154_v62 }
  0x49   :  { %v161_v5 = vadd.f32 %v160_v0, %v154_v62  ;;  %v170_v6 = vadd.f32 %v169_v1, %v158_v63  ;;  %v179_v7 = vrot.slane %v178_v2, 4  ;;  %v189_v8 = vrot.slane %v188_v3, 4 }
  0x4a   :  { %v199_v9 = vrot.slane %v198_v4, 4 }
  0x4b   :  { %v162_v10 = vrot.slane %v161_v5, 2  ;;  %v171_v11 = vrot.slane %v170_v6, 2  ;;  %v180_v12 = vadd.f32 %v179_v7, %v178_v2  ;;  %v190_v13 = vadd.f32 %v189_v8, %v188_v3 }
  0x4c   :  { %v200_v14 = vadd.f32 %v199_v9, %v198_v4 }
  0x4d   :  { %v163_v15 = vadd.f32 %v162_v10, %v161_v5  ;;  %v172_v16 = vadd.f32 %v171_v11, %v170_v6  ;;  %v181_v17 = vrot.slane %v180_v12, 2  ;;  %v191_v18 = vrot.slane %v190_v13, 2 }
  0x4e   :  { %v201_v19 = vrot.slane %v200_v14, 2 }
  0x4f   :  { %v164_v20 = vrot.slane %v163_v15, 1  ;;  %v173_v21 = vrot.slane %v172_v16, 1  ;;  %v182_v22 = vadd.f32 %v181_v17, %v180_v12  ;;  %v192_v23 = vadd.f32 %v191_v18, %v190_v13 }
  0x50   :  { %v202_v26 = vadd.f32 %v201_v19, %v200_v14 }
  0x51   :  { %v165_v27 = vadd.f32 %v164_v20, %v163_v15  ;;  %v174_v28 = vadd.f32 %v173_v21, %v172_v16  ;;  %v183_v29 = vrot.slane %v182_v22, 1  ;;  %v193_v30 = vrot.slane %v192_v23, 1 }
  0x52   :  { %v203_v33 = vrot.slane %v202_v26, 1 }
  0x53   :  { %v166_v34 = vadd.f32 %v165_v27, %v159_v24  ;;  %v175_v35 = vadd.f32 %v174_v28, %v168_v25  ;;  %v184_v36 = vadd.f32 %v183_v29, %v182_v22  ;;  %v194_v37 = vadd.f32 %v193_v30, %v192_v23 }
  0x54   :  { %v204_v39 = vadd.f32 %v203_v33, %v202_v26 }
  0x55   :  { %167 = vst [vmem:[#allocation2] sm:$0x1] %v166_v34  ;;  %176 = vst [vmem:[#allocation2 + $0x1] sm:$0x1] %v175_v35  ;;  %v185_v40 = vadd.f32 %v184_v36, %v177_v31  ;;  %v195_v41 = vadd.f32 %v194_v37, %v187_v32 }
  0x56   :  { %v205_v42 = vadd.f32 %v204_v39, %v197_v38 }
  0x57   :  { %186 = vst [vmem:[#allocation2 + $0x2] sm:$0x1] %v185_v40  ;;  %196 = vst [vmem:[#allocation2 + $0x3] sm:$0x1] %v195_v41 }
  0x58   :  { %206 = vst [vmem:[#allocation2 + $0x4] sm:$0x1] %v205_v42 }
  0x59 PF:  { %s309_s0 = smov [#allocation9]  }
  0x5a   :  { %s218_s3 = sshll.u32 %s309_s0, 4  ;;  %s219_s3 = int_to_ptr.vmem [resolvable:$true] %s218_s3 }
  0x5b   :  { %s278_s16 = scalar_lea.vmem %s219_s3, 128  ;;  %p283_p2 = scmp.lt.s32.totalorder %s219_s3, %s219_s3 }
  0x5c   :  { %p279_p1 = scmp.ne.s32.totalorder %s219_s3, %s278_s16  ;;  %p284_p3 = scmp.lt.s32.totalorder %s278_s16, %s278_s16 }
  0x5e   :  { %p285_p4 = por %p284_p3, %p283_p2 }
  0x5f   :  { %v210_v43 = vld [vmem:[#allocation2] sm:$0xff] }
  0x60   :  { %211 = vst [vmem:[#allocation9] sm:$0xff] %v210_v43  ;;  %p286_p5 = pnand %p285_p4, %p279_p1 }
  0x62   :  { %289 = shalt.err (!%p286_p5)
}
  0x63   :  { %s290_s19 = scalar_lea.hbm %s389_s4, 128 }
  0x64   :  { %p291_p6 = scmp.ne.s32.totalorder %s389_s4, %s290_s19  ;;  %p294_p7 = scmp.lt.u32.totalorder %s290_s19, %s389_s4 }
  0x66   :  { %p296_p8 = pnand %p294_p7, %p291_p6 }
  0x68   :  { %299 = shalt.err (!%p296_p8)
}
  0x69   :  { %221 = dma.vmem_to_hbm [thread:$0]  %s219_s3, 128, %s389_s4, [#allocation8]  }
  0x6a   :  { %304 = dma.done.wait [#allocation8], 128  }
  0x6b   :  { %305 = vsyncadd [#allocation8], 4294967168 }
  0x6c   :  { %225 = vsyncpa [#allocation7], 1 }
  0x6d   :  { %226 = vsyncpa [#allocation8], 1 }

</bundles_post_ra>
